<compile_context>
chip_gen: v6e
topology: v6e:2x2x1
jax: 0.10.0
libtpu: 0.0.40
codegen_flags: <defaults>
</compile_context>

<pallas_src>
import jax
import jax.numpy as jnp
from jax.experimental import pallas as pl
from jax.experimental.pallas import tpu as pltpu

INPUT_SIZE = 28 * 28      # 784 (K)
NUM_CLASSES = 10          # logical N
N_PAD = 128               # lane-dense padded N
TB_DEFAULT = 4096         # max batch tile (rows) per grid step
VMEM_LIMIT_BYTES = 48 << 20   # safe on v5e/v6e (128 MiB) and v7x (64 MiB) VMEM


def _round_up(x, m):
    return ((x + m - 1) // m) * m


def _linear_kernel(x_ref, wt_ref, b_ref, o_ref):
    # x_ref : (TB, 784)   native dtype (f32 here)  VMEM, streamed per step
    # wt_ref: (784, 128)  bf16  VMEM, resident (constant index_map)
    # b_ref : (1, 128)    f32   VMEM, resident
    # o_ref : (TB, 128)   f32   VMEM
    x = x_ref[...].astype(jnp.bfloat16)            # in-kernel cast (VPU, hidden under DMA)
    acc = jnp.dot(x, wt_ref[...], preferred_element_type=jnp.float32)
    o_ref[...] = acc + b_ref[...]                  # bias add + f32 store


def mnist_linear(x_flat, wt_pad, b_pad, *, tb_max=TB_DEFAULT):
    """x_flat: (B, 784) float, wt_pad: (784, 128) bf16, b_pad: (1, 128) f32
    -> (B, 10) f32 logits."""
    B = x_flat.shape[0]

    # Balanced tile selection: split B into near-equal tiles <= tb_max,
    # rounded up to the 8-sublane requirement.  Keep >= 2 tiles for large B so
    # the "parallel" batch axis can shard across both v7x TensorCores.
    n_tiles = pl.cdiv(B, tb_max)
    if B >= 1024:
        n_tiles = max(n_tiles, 2)
    tb = _round_up(pl.cdiv(B, n_tiles), 8)
    grid = (pl.cdiv(B, tb),)        # last block may be partial (masked stores)

    x_bytes = B * INPUT_SIZE * x_flat.dtype.itemsize
    cost = pl.CostEstimate(
        flops=2 * B * INPUT_SIZE * N_PAD,
        transcendentals=0,
        bytes_accessed=(x_bytes                       # x (native dtype)
                        + INPUT_SIZE * N_PAD * 2      # W^T (bf16, resident)
                        + N_PAD * 4                   # bias
                        + B * N_PAD * 4),             # out (f32)
    )

    out = pl.pallas_call(
        _linear_kernel,
        out_shape=jax.ShapeDtypeStruct((B, N_PAD), jnp.float32),
        grid_spec=pltpu.PrefetchScalarGridSpec(
            num_scalar_prefetch=0,
            grid=grid,
            in_specs=[
                pl.BlockSpec((tb, INPUT_SIZE), lambda i: (i, 0)),     # x streams
                pl.BlockSpec((INPUT_SIZE, N_PAD), lambda i: (0, 0)),  # W resident
                pl.BlockSpec((1, N_PAD), lambda i: (0, 0)),           # b resident
            ],
            out_specs=pl.BlockSpec((tb, N_PAD), lambda i: (i, 0)),
        ),
        compiler_params=pltpu.CompilerParams(
            dimension_semantics=("parallel",),
            vmem_limit_bytes=VMEM_LIMIT_BYTES),
        cost_estimate=cost,
    )(x_flat, wt_pad, b_pad)

    # Single lax.slice over the class dim only (batch dim is already exact).
    # A consumer that can mask the 118 padded columns itself (e.g. fused CE
    # loss) could consume `out` directly and skip this pass.
    return out[:, :NUM_CLASSES]


class MnistmodelPallas:
    """JAX/Pallas mirror of the PyTorch Mnistmodel forward pass."""

    def __init__(self, key):
        # nn.Linear default init: U(-1/sqrt(fan_in), 1/sqrt(fan_in))
        kw, kb = jax.random.split(key)
        bound = 1.0 / jnp.sqrt(jnp.float32(INPUT_SIZE))
        self.w = jax.random.uniform(
            kw, (NUM_CLASSES, INPUT_SIZE), jnp.float32, -bound, bound)
        self.b = jax.random.uniform(
            kb, (NUM_CLASSES,), jnp.float32, -bound, bound)

        # Pre-transpose + lane-pad the parameters once at init (not per call).
        wt = jnp.zeros((INPUT_SIZE, N_PAD), jnp.float32)
        wt = wt.at[:, :NUM_CLASSES].set(self.w.T)
        self.wt_pad = wt.astype(jnp.bfloat16)              # (784, 128) bf16
        bp = jnp.zeros((1, N_PAD), jnp.float32)
        self.b_pad = bp.at[0, :NUM_CLASSES].set(self.b)    # (1, 128) f32

    def __call__(self, x):
        # x: any leading dims collapsing to (-1, 784), e.g. (N, 1, 28, 28)
        x_flat = x.reshape(-1, INPUT_SIZE)
        return mnist_linear(x_flat, self.wt_pad, self.b_pad)


if __name__ == "__main__":
    key = jax.random.PRNGKey(0)
    k_param, k_x = jax.random.split(key)

    model = MnistmodelPallas(k_param)

    # Small MNIST-like batch: NCHW (batch=8, channels=1, 28x28)
    x = jax.random.normal(k_x, (8, 1, 28, 28), jnp.float32)

    out = model(x)
    out = jax.block_until_ready(out)

    # Reference check in plain JAX (f32).  Kernel matmuls in bf16 with f32
    # accumulation, so allow bf16-level tolerance.
    ref = x.reshape(-1, INPUT_SIZE) @ model.w.T + model.b
    assert out.shape == (8, NUM_CLASSES)
    assert jnp.allclose(out, ref, atol=2e-2, rtol=2e-2)

    print("KERNEL_OK")
</pallas_src>

<mosaic_0001>
module attributes {stable_mosaic.version = 11 : i64} {
  func.func @_linear_kernel(%arg0: i32, %arg1: memref<8x784xf32, #tpu.memory_space<vmem>>, %arg2: memref<784x128xbf16, #tpu.memory_space<vmem>>, %arg3: memref<1x128xf32, #tpu.memory_space<vmem>>, %arg4: memref<8x128xf32, #tpu.memory_space<vmem>>) attributes {dimension_semantics = [#tpu.dimension_semantics<parallel>], iteration_bounds = array<i64: 1>, scalar_prefetch = 0 : i64, scratch_operands = 0 : i64, tpu.core_type = #tpu.core_type<tc>, window_params = [{transform_indices = @transform_0, window_bounds = array<i64: 8, 784>}, {pipeline_mode = #tpu.pipeline_mode<synchronous>, transform_indices = @transform_1, window_bounds = array<i64: 784, 128>}, {pipeline_mode = #tpu.pipeline_mode<synchronous>, transform_indices = @transform_2, window_bounds = array<i64: 1, 128>}, {transform_indices = @transform_3, window_bounds = array<i64: 8, 128>}]} {
    %c0 = arith.constant 0 : index
    %c0_0 = arith.constant 0 : index
    %0 = vector.load %arg1[%c0, %c0_0] : memref<8x784xf32, #tpu.memory_space<vmem>>, vector<8x784xf32>
    %1 = arith.truncf %0 : vector<8x784xf32> to vector<8x784xbf16>
    %c0_1 = arith.constant 0 : index
    %c0_2 = arith.constant 0 : index
    %2 = vector.load %arg2[%c0_1, %c0_2] : memref<784x128xbf16, #tpu.memory_space<vmem>>, vector<784x128xbf16>
    %cst = arith.constant dense<0.000000e+00> : vector<8x128xf32>
    %3 = tpu.matmul %1, %2, %cst {dimension_numbers = #tpu.dot_dimension_numbers<[1], [0], [0], [1], [0, 0, 1, 1], [], []>} : vector<8x784xbf16>, vector<784x128xbf16>, vector<8x128xf32> -> vector<8x128xf32>
    %c0_3 = arith.constant 0 : index
    %c0_4 = arith.constant 0 : index
    %4 = vector.load %arg3[%c0_3, %c0_4] : memref<1x128xf32, #tpu.memory_space<vmem>>, vector<1x128xf32>
    %5 = vector.broadcast %4 : vector<1x128xf32> to vector<8x128xf32>
    %6 = arith.addf %3, %5 : vector<8x128xf32>
    %c0_5 = arith.constant 0 : index
    %c0_6 = arith.constant 0 : index
    %7 = vector.load %arg4[%c0_5, %c0_6] : memref<8x128xf32, #tpu.memory_space<vmem>>, vector<8x128xf32>
    tpu.vector_store %arg4[%c0_5, %c0_6], %6 {strides = array<i32>} : memref<8x128xf32, #tpu.memory_space<vmem>>, vector<8x128xf32>,
    return
  }
  func.func @transform_0(%arg0: i32) -> (i32, i32) {
    %c0_i32 = arith.constant 0 : i32
    %c0_i32_0 = arith.constant 0 : i32
    return %arg0, %c0_i32 : i32, i32
  }
  func.func @transform_1(%arg0: i32) -> (i32, i32) {
    %c0_i32 = arith.constant 0 : i32
    %c0_i32_0 = arith.constant 0 : i32
    %c0_i32_1 = arith.constant 0 : i32
    return %c0_i32, %c0_i32_0 : i32, i32
  }
  func.func @transform_2(%arg0: i32) -> (i32, i32) {
    %c0_i32 = arith.constant 0 : i32
    %c0_i32_0 = arith.constant 0 : i32
    %c0_i32_1 = arith.constant 0 : i32
    return %c0_i32, %c0_i32_0 : i32, i32
  }
  func.func @transform_3(%arg0: i32) -> (i32, i32) {
    %c0_i32 = arith.constant 0 : i32
    %c0_i32_0 = arith.constant 0 : i32
    return %arg0, %c0_i32 : i32, i32
  }
}

</mosaic_0001>

<bundles_post_ra>
// kernel: tpu_custom_call.1
= control target key start
LH: loop header
LB: loop body
LE: loop exit
PB: predicated region body
PF: predicated region fallthrough
CT: control target
= control target key end

     0   :  { %8 = vsyncpa [#allocation3], 0  ;;  %s922_s0 = inlined_call_operand.hbm [shape: f32[8,784], index: 0, kind: input, shape index: {}]   ;;  %s923_s1 = inlined_call_operand.hbm [shape: bf16[784,128], index: 1, kind: input, shape index: {}]   ;;  %s924_s2 = inlined_call_operand.vmem [shape: f32[1,128], index: 2, kind: input, shape index: {}]   ;;  %s925_s3 = inlined_call_operand.hbm [shape: f32[8,128], index: 3, kind: output, shape index: {}]  }
   0x1   :  { %9 = vsyncpa [#allocation6], 0 }
   0x2   :  { %10 = vsyncpa [#allocation4], 0  ;;  %s883_s12 = smov [#allocation2]   ;;  %s884_s14 = smov [#allocation5]  }
   0x3   :  { %s17_s13 = sshll.u32 %s883_s12, 4  ;;  %s26_s15 = sshll.u32 %s884_s14, 4  ;;  %s18_s13 = int_to_ptr.vmem [resolvable:$true] %s17_s13  ;;  %s27_s15 = int_to_ptr.vmem [resolvable:$true] %s26_s15 }
   0x4   :  { %s825_s16 = scalar_lea.vmem %s18_s13, 896  ;;  %p830_p1 = scmp.lt.s32.totalorder %s18_s13, %s18_s13 }
   0x5   :  { %p826_p0 = scmp.ne.s32.totalorder %s18_s13, %s825_s16  ;;  %p831_p2 = scmp.lt.s32.totalorder %s825_s16, %s825_s16 }
   0x7   :  { %p832_p3 = por %p831_p2, %p830_p1 }
   0x9   :  { %p833_p4 = pnand %p832_p3, %p826_p0 }
   0xb   :  { %836 = shalt.err (!%p833_p4)
}
   0xc   :  { %20 = dma.hbm_to_vmem [thread:$0]  %s922_s0, 896, %s18_s13, [#allocation3]  }
   0xd   :  { %s845_s19 = scalar_lea.vmem %s27_s15, 6272  ;;  %p850_p6 = scmp.lt.s32.totalorder %s27_s15, %s27_s15 }
   0xe   :  { %p846_p5 = scmp.ne.s32.totalorder %s27_s15, %s845_s19  ;;  %p851_p7 = scmp.lt.s32.totalorder %s845_s19, %s845_s19 }
  0x10   :  { %p852_p8 = por %p851_p7, %p850_p6 }
  0x12   :  { %p853_p9 = pnand %p852_p8, %p846_p5 }
  0x14   :  { %856 = shalt.err (!%p853_p9)
}
  0x15   :  { %s885_s20 = smov 64   ;;  %s886_s21 = smov 4  }
  0x16   :  { %32 = dma.hbm_to_vmem [thread:$0]  %s923_s1, 6272, %s27_s15, [#allocation6], %s885_s20, %s885_s20, %s886_s21  }
  0x17   :  { %877 = dma.done.wait [#allocation3], 896  }
  0x18   :  { %878 = vsyncadd [#allocation3], 4294966400 }
  0x19   :  { %879 = dma.done.wait [#allocation6], 6272  }
  0x1a   :  { %880 = vsyncadd [#allocation6], 4294961024  ;;  %v768_v0 = vld [vmem:[#allocation5 + $0x78] sm:$0xff]   ;;  %v772_v4 = vld [vmem:[#allocation5 + $0x70] sm:$0xff]   ;;  %v887_v44 = vmov 0.0   ;;  %vm888_vm0 = vmmov 0  }
  0x1b   :  { %v769_v1 = vld [vmem:[#allocation5 + $0x38] sm:$0xff]   ;;  %687 = vmatprep.subr.bf16.mxu0 %v768_v0  ;;  %v773_v5 = vld [vmem:[#allocation5 + $0x30] sm:$0xff]   ;;  %v776_v8 = vld [vmem:[#allocation5 + $0x68] sm:$0xff]   ;;  %vm455_vm1 = vcmask 130048   ;;  %s889_s24 = smov [#allocation7]  }
  0x1c   :  { %v770_v2 = vld [vmem:[#allocation5 + $0xf8] sm:$0xff]   ;;  %688 = vmatpush3.bf16.msra.mxu0 %v769_v1  ;;  %v774_v6 = vld [vmem:[#allocation5 + $0xf0] sm:$0xff]   ;;  %v777_v9 = vld [vmem:[#allocation5 + $0x28] sm:$0xff]   ;;  %s626_s25 = sshll.u32 %s889_s24, 4  ;;  %s627_s25 = int_to_ptr.vmem [resolvable:$true] %s626_s25 }
  0x1d   :  { %v771_v3 = vld [vmem:[#allocation5 + $0xb8] sm:$0xff]   ;;  %709 = vmatprep.subr.bf16.mxu1 %v770_v2  ;;  %689 = vmatprep.subr.bf16.mxu0 %v772_v4  ;;  %v775_v7 = vld [vmem:[#allocation5 + $0xb0] sm:$0xff]   ;;  %v778_v10 = vld [vmem:[#allocation5 + $0xe8] sm:$0xff]   ;;  %s857_s26 = scalar_lea.vmem %s627_s25, 128  ;;  %p862_p11 = scmp.lt.s32.totalorder %s627_s25, %s627_s25 }
  0x1e   :  { %710 = vmatpush3.bf16.msra.mxu1 %v771_v3  ;;  %v779_v11 = vld [vmem:[#allocation5 + $0xa8] sm:$0xff]   ;;  %v780_v12 = vld [vmem:[#allocation5 + $0x60] sm:$0xff]   ;;  %v784_v16 = vld [vmem:[#allocation5 + $0x58] sm:$0xff]   ;;  %p858_p10 = scmp.ne.s32.totalorder %s627_s25, %s857_s26  ;;  %p863_p12 = scmp.lt.s32.totalorder %s857_s26, %s857_s26 }
  0x1f   :  { %711 = vmatprep.subr.bf16.mxu1 %v774_v6  ;;  %v781_v13 = vld [vmem:[#allocation5 + $0x20] sm:$0xff]   ;;  %v785_v17 = vld [vmem:[#allocation5 + $0x18] sm:$0xff]   ;;  %v788_v20 = vld [vmem:[#allocation5 + $0x50] sm:$0xff]  }
  0x20   :  { %690 = vmatpush3.bf16.msra.mxu0 %v773_v5  ;;  %v782_v14 = vld [vmem:[#allocation5 + $0xe0] sm:$0xff]   ;;  %v786_v18 = vld [vmem:[#allocation5 + $0xd8] sm:$0xff]   ;;  %v789_v21 = vld [vmem:[#allocation5 + $0x10] sm:$0xff]   ;;  %p864_p13 = por %p863_p12, %p862_p11 }
  0x21   :  { %691 = vmatprep.subr.bf16.mxu0 %v776_v8  ;;  %v783_v15 = vld [vmem:[#allocation5 + $0xa0] sm:$0xff]   ;;  %v787_v19 = vld [vmem:[#allocation5 + $0x98] sm:$0xff]   ;;  %v790_v22 = vld [vmem:[#allocation5 + $0xd0] sm:$0xff]  }
  0x22   :  { %712 = vmatpush3.bf16.msra.mxu1 %v775_v7  ;;  %v791_v23 = vld [vmem:[#allocation5 + $0x90] sm:$0xff]   ;;  %v792_v24 = vld [vmem:[#allocation5 + $0x48] sm:$0xff]   ;;  %v796_v28 = vld [vmem:[#allocation5 + $0x40] sm:$0xff]   ;;  %p865_p0 = pnand %p864_p13, %p858_p10 }
  0x23   :  { %713 = vmatprep.subr.bf16.mxu1 %v778_v10  ;;  %v793_v25 = vld [vmem:[#allocation5 + $0x8] sm:$0xff]   ;;  %v797_v29 = vld [vmem:[#allocation5] sm:$0xff]   ;;  %v43_v31 = vld [vmem:[#allocation2 + $0x8] sm:$0xff] }
  0x24   :  { %692 = vmatpush3.bf16.msra.mxu0 %v777_v9  ;;  %v794_v26 = vld [vmem:[#allocation5 + $0xc8] sm:$0xff]   ;;  %v798_v30 = vld [vmem:[#allocation5 + $0xc0] sm:$0xff]   ;;  %v50_v32 = vpack.c.bf16 %v43_v31, %v43_v31  ;;  %v800_v36 = vld [vmem:[#allocation5 + $0x178] sm:$0xff]  }
  0x25   :  { %693 = vmatprep.subr.bf16.mxu0 %v780_v12  ;;  %v795_v27 = vld [vmem:[#allocation5 + $0x88] sm:$0xff]   ;;  %v799_v33 = vld [vmem:[#allocation5 + $0x80] sm:$0xff]   ;;  %v801_v39 = vld [vmem:[#allocation5 + $0x138] sm:$0xff]  }
  0x26   :  { %714 = vmatpush3.bf16.msra.mxu1 %v779_v11  ;;  %v42_v34 = vld [vmem:[#allocation2] sm:$0xff]  ;;  %v45_v37 = vld [vmem:[#allocation2 + $0x18] sm:$0xff]  ;;  %491 = vmatprep.mubr.bf16.mxu0 %v50_v32  ;;  %v44_v40 = vld [vmem:[#allocation2 + $0x10] sm:$0xff] }
  0x27   :  { %715 = vmatprep.subr.bf16.mxu1 %v782_v14  ;;  %v49_v35 = vpack.c.bf16 %v42_v34, %v42_v34  ;;  %v52_v38 = vpack.c.bf16 %v45_v37, %v45_v37  ;;  %v51_v41 = vpack.c.bf16 %v44_v40, %v44_v40  ;;  %v802_v42 = vld [vmem:[#allocation5 + $0x170] sm:$0xff]   ;;  %v804_v45 = vld [vmem:[#allocation5 + $0x168] sm:$0xff]   ;;  %v806_v47 = vld [vmem:[#allocation5 + $0x160] sm:$0xff]  }
  0x28   :  { %694 = vmatpush3.bf16.msra.mxu0 %v781_v13  ;;  %v803_v43 = vld [vmem:[#allocation5 + $0x130] sm:$0xff]   ;;  %v805_v46 = vld [vmem:[#allocation5 + $0x128] sm:$0xff]   ;;  %v807_v48 = vld [vmem:[#allocation5 + $0x120] sm:$0xff]  }
  0x29   :  { %695 = vmatprep.subr.bf16.mxu0 %v784_v16  ;;  %531 = vmatprep.mubr.bf16.mxu1 %v52_v38  ;;  %v808_v49 = vld [vmem:[#allocation5 + $0x158] sm:$0xff]   ;;  %v814_v51 = vld [vmem:[#allocation5 + $0x180] sm:$0xff]   ;;  %v810_v52 = vld [vmem:[#allocation5 + $0x150] sm:$0xff]  }
  0x2a   :  { %716 = vmatpush3.bf16.msra.mxu1 %v783_v15  ;;  %v809_v50 = vld [vmem:[#allocation5 + $0x118] sm:$0xff]   ;;  %v47_v54 = vld [vmem:[#allocation2 + $0x28] sm:$0xff]  ;;  %v812_v58 = vld [vmem:[#allocation5 + $0x148] sm:$0xff]  }
  0x2b   :  { %717 = vmatprep.subr.bf16.mxu1 %v786_v18  ;;  %v48_v53 = vld [vmem:[#allocation2 + $0x30] sm:$0xff]  ;;  %v54_v56 = vpack.c.bf16 %v47_v54, %v47_v54  ;;  %v811_v57 = vld [vmem:[#allocation5 + $0x110] sm:$0xff]   ;;  %v813_v59 = vld [vmem:[#allocation5 + $0x108] sm:$0xff]  }
  0x2c   :  { %696 = vmatpush3.bf16.msra.mxu0 %v785_v17  ;;  %v55_v55 = vpack.c.bf16 %v48_v53, %v48_v53  ;;  %v815_v60 = vld [vmem:[#allocation5 + $0x140] sm:$0xff]   ;;  %v46_v62 = vld [vmem:[#allocation2 + $0x20] sm:$0xff] }
  0x2d   :  { %697 = vmatprep.subr.bf16.mxu0 %v788_v20  ;;  %v816_v61 = vld [vmem:[#allocation5 + $0x100] sm:$0xff]   ;;  %v53_v63 = vpack.c.bf16 %v46_v62, %v46_v62  ;;  %v636_v13 = vld [vmem:[%s924_s2] ss:$0 sm:$0xff] }
  0x2e   :  { %718 = vmatpush3.bf16.msra.mxu1 %v787_v19 }
  0x2f   :  { %719 = vmatprep.subr.bf16.mxu1 %v790_v22 }
  0x30   :  { %698 = vmatpush3.bf16.msra.mxu0 %v789_v21 }
  0x31   :  { %699 = vmatprep.subr.bf16.mxu0 %v792_v24 }
  0x32   :  { %720 = vmatpush3.bf16.msra.mxu1 %v791_v23 }
  0x33   :  { %721 = vmatprep.subr.bf16.mxu1 %v794_v26 }
  0x34   :  { %700 = vmatpush3.bf16.msra.mxu0 %v793_v25 }
  0x35   :  { %701 = vmatprep.subr.bf16.mxu0 %v796_v28 }
  0x36   :  { %722 = vmatpush3.bf16.msra.mxu1 %v795_v27 }
  0x37   :  { %723 = vmatprep.subr.bf16.mxu1 %v798_v30 }
  0x38   :  { %702 = vmatpush3.bf16.msra.mxu0 %v797_v29 }
  0x39   :  { %731 = vmatprep.subr.bf16.mxu0 %v800_v36 }
  0x3a   :  { %724 = vmatpush3.bf16.msra.mxu1 %v799_v33 }
  0x3b   :  { %492 = vmatmul.mubr.bf16.vlgmr.msra.gmra.mxu0 %v49_v35  ;;  %755 = vmatprep.subr.bf16.mxu1 %v887_v44 }
  0x3c   :  { %732 = vmatpush3.bf16.msra.mxu0 %v801_v39  ;;  %571 = vmatprep.mubr.bf16.mxu0 %v54_v56 }
  0x3d   :  { %532 = vmatmul.mubr.bf16.vlgmr.msra.gmra.mxu1 %v51_v41  ;;  %733 = vmatprep.subr.bf16.mxu0 %v802_v42 }
  0x3e   :  { %757 = vmatprep.mubr.msk.bf16.mxu1 %vm888_vm0, %v887_v44  ;;  %756 = vmatpush3.bf16.msra.mxu1 %v814_v51 }
  0x40   :  { %734 = vmatpush3.bf16.msra.mxu0 %v803_v43 }
  0x41   :  { %735 = vmatprep.subr.bf16.mxu0 %v804_v45 }
  0x44   :  { %736 = vmatpush3.bf16.msra.mxu0 %v805_v46 }
  0x45   :  { %737 = vmatprep.subr.bf16.mxu0 %v806_v47  ;;  %758 = vmatmul.mubr.msk.bf16.vlgmr.msra.gmra.mxu1 %vm455_vm1, %v55_v55 }
  0x48   :  { %738 = vmatpush3.bf16.msra.mxu0 %v807_v48 }
  0x49   :  { %739 = vmatprep.subr.bf16.mxu0 %v808_v49 }
  0x4c   :  { %740 = vmatpush3.bf16.msra.mxu0 %v809_v50 }
  0x4d   :  { %741 = vmatprep.subr.bf16.mxu0 %v810_v52 }
  0x50   :  { %742 = vmatpush3.bf16.msra.mxu0 %v811_v57 }
  0x51   :  { %743 = vmatprep.subr.bf16.mxu0 %v812_v58 }
  0x54   :  { %744 = vmatpush3.bf16.msra.mxu0 %v813_v59 }
  0x55   :  { %745 = vmatprep.subr.bf16.mxu0 %v815_v60 }
  0x58   :  { %746 = vmatpush3.bf16.msra.mxu0 %v816_v61 }
  0x5b   :  { %572 = vmatmul.mubr.bf16.vlgmr.msra.gmra.mxu0 %v53_v63 }
  0xfb   :  { %v703_v0 = vpop.f32.mrf.mxu0 }
  0xfd   :  { %v704_v1 = vpop.f32.mrf.mxu0  ;;  %v725_v2 = vpop.f32.mrf.mxu1 }
  0xfe   :  { %v705_v12 = vadd.f32 %v704_v1, %v703_v0 }
  0xff   :  { %v706_v3 = vpop.f32.mrf.mxu0  ;;  %v726_v4 = vpop.f32.mrf.mxu1 }
 0x100   :  { %v494_v14 = vadd.f32 %v705_v12, %v636_v13  ;;  %v727_v15 = vadd.f32 %v726_v4, %v725_v2 }
 0x101   :  { %v707_v5 = vpop.f32.mrf.mxu0  ;;  %v728_v6 = vpop.f32.mrf.mxu1 }
 0x102   :  { %v534_v18 = vadd.f32 %v727_v15, %v494_v14 }
 0x103   :  { %v729_v7 = vpop.f32.mrf.mxu1 }
 0x105   :  { %v613_v8 = vpop.f32.mrf.mxu1 }
 0x107   :  { %v759_v9 = vpop.f32.mrf.mxu1 }
 0x109   :  { %v616_v10 = vpop.f32.mrf.mxu1 }
 0x10b   :  { %v760_v11 = vpop.f32.mrf.mxu1 }
 0x11b   :  { %v747_v16 = vpop.f32.mrf.mxu0 }
 0x11d   :  { %v748_v17 = vpop.f32.mrf.mxu0 }
 0x11e   :  { %v749_v19 = vadd.f32 %v748_v17, %v747_v16 }
 0x11f   :  { %v750_v20 = vpop.f32.mrf.mxu0 }
 0x120   :  { %v574_v21 = vadd.f32 %v749_v19, %v534_v18 }
 0x121   :  { %v751_v22 = vpop.f32.mrf.mxu0 }
 0x122   :  { %v614_v23 = vadd.f32 %v613_v8, %v574_v21 }
 0x124   :  { %619 = vst [vmem:[#allocation7] sm:$0xff] %v614_v23 }
 0x125   :  { %868 = shalt.err (!%p865_p0)
}
 0x126   :  { %629 = dma.vmem_to_hbm [thread:$0]  %s627_s25, 128, %s925_s3, [#allocation4]  }
 0x127   :  { %881 = dma.done.wait [#allocation4], 128  }
 0x128   :  { %882 = vsyncadd [#allocation4], 4294967168 }
 0x129   :  { %633 = vsyncpa [#allocation3], 1 }
 0x12a   :  { %634 = vsyncpa [#allocation6], 1 }
 0x12b   :  { %635 = vsyncpa [#allocation4], 1 }

</bundles_post_ra>
